<compile_context>
chip_gen: v7x
topology: tpu7x:2x2x1
jax: 0.10.0
libtpu: 0.0.40
codegen_flags: <defaults>
</compile_context>

<pallas_src>
import functools
import numpy as np
import jax
import jax.numpy as jnp
from jax.experimental import pallas as pl
from jax.experimental.pallas import tpu as pltpu


# --------------------------------------------------------------------------- #
# Pallas kernel: one fused matmul chain (FC tower + folded theta∘seasonal head)
# --------------------------------------------------------------------------- #
def _fused_nbeats_kernel(x_ref, w1_ref, b1_ref, wh_ref, bh_ref, wbf_ref, out_ref,
                         *, n_hidden):
    """Single invocation (no grid), single matmul chain over all targets at once.

    x_ref  : (B, Lb*C)                  flattened input (channel select folded in W1)
    w1_ref : (Lb*C, UT)   b1_ref: (1, UT)          with UT = tar_num * units
    wh_ref : (NL1, UT, UT) bh_ref: (NL1, 1, UT)    block-diagonal hidden layers
    wbf_ref: (UT, tar_num*(Lb+Lf))                 block-diag folded projection
    out_ref: (B, tar_num*(Lb+Lf))                  packed [back_i | fore_i] per target
    """
    h = jnp.dot(x_ref[...], w1_ref[...], preferred_element_type=jnp.float32) + b1_ref[...]
    h = jnp.maximum(h, 0.0)
    # NL1 is tiny (3); a static unrolled loop is fine here.
    for l in range(n_hidden):
        h = jnp.dot(h, wh_ref[l], preferred_element_type=jnp.float32) + bh_ref[l]
        h = jnp.maximum(h, 0.0)
    out_ref[...] = jnp.dot(h, wbf_ref[...], preferred_element_type=jnp.float32)


# --------------------------------------------------------------------------- #
# Module setup (constants / parameters) — plain JAX / numpy glue
# --------------------------------------------------------------------------- #
def _linspace(backcast_length, forecast_length):
    norm = backcast_length + forecast_length
    stop = backcast_length + forecast_length - 1
    lin = np.linspace(0.0 / norm, stop / norm, backcast_length + forecast_length,
                      dtype=np.float32)
    return lin[:backcast_length], lin[backcast_length:]


def make_seasonal_basis(backcast_length, forecast_length, thetas_dim, min_period, n_channels):
    b_ls, f_ls = _linspace(backcast_length, forecast_length)
    p1, p2 = (thetas_dim // 2, thetas_dim // 2) if thetas_dim % 2 == 0 else (
        thetas_dim // 2, thetas_dim // 2 + 1)

    def freqs(n):
        return np.linspace(0, (backcast_length + forecast_length) / min_period, n)

    s1_b = np.stack([np.cos(2 * np.pi * i * b_ls) for i in freqs(p1)]).astype(np.float32)
    s2_b = np.stack([np.sin(2 * np.pi * i * b_ls) for i in freqs(p2)]).astype(np.float32)
    s_b = np.concatenate([s1_b, s2_b], axis=0)                      # [T, Lb]
    s1_f = np.stack([np.cos(2 * np.pi * i * f_ls) for i in freqs(p1)]).astype(np.float32)
    s2_f = np.stack([np.sin(2 * np.pi * i * f_ls) for i in freqs(p2)]).astype(np.float32)
    s_f = np.concatenate([s1_f, s2_f], axis=0)                      # [T, Lf]
    # identical copies along channel dim (dim=2), matching the buffer in __init__
    S_backcast = np.stack([s_b] * n_channels, axis=2)               # [T, Lb, C]
    S_forecast = np.stack([s_f] * n_channels, axis=2)               # [T, Lf, C]
    return jnp.asarray(S_backcast), jnp.asarray(S_forecast)


def init_params(key, *, units, thetas_dim, num_block_layers, backcast_length,
                n_channels, tar_num):
    n_hidden = num_block_layers - 1
    ks = jax.random.split(key, 8)
    scale = 0.1
    params = dict(
        w1=scale * jax.random.normal(ks[0], (n_channels, backcast_length, units), jnp.float32),
        b1=scale * jax.random.normal(ks[1], (n_channels, 1, units), jnp.float32),
        wh=scale * jax.random.normal(ks[2], (n_channels, n_hidden, units, units), jnp.float32),
        bh=scale * jax.random.normal(ks[3], (n_channels, n_hidden, 1, units), jnp.float32),
        wt=scale * jax.random.normal(ks[4], (n_channels, units, thetas_dim), jnp.float32),
        agg_w=scale * jax.random.normal(ks[5], (tar_num, n_channels), jnp.float32),
        agg_b=scale * jax.random.normal(ks[6], (tar_num,), jnp.float32),
    )
    return params


def precompute_inference_params(params, S_backcast, S_forecast, tar_pos):
    """One-time fold of constant-only math (depends only on params / constant buffers).

    Builds:
      * Wbf[i]  = wt[tar_pos[i]] @ [Sb_final[i] | Sf_final[i]]      (theta∘seasonal fold)
      * block-diagonal merged weights so the kernel runs ONE matmul chain
      * channel selection x[..., tar_pos[i]] folded into the first-layer weight
        (rows of x.reshape(B, Lb*C) are indexed l*C + c in row-major order)
    """
    tar_idx = np.asarray(tar_pos)
    tar_num = len(tar_pos)
    C, Lb, U = params["w1"].shape
    NL1 = params["wh"].shape[1]
    Lf = S_forecast.shape[1]
    L2 = Lb + Lf
    UT = tar_num * U

    # agg_layer[i] applied to the seasonal buffers: S_*_final[i] = S_* @ agg_w[i] + agg_b[i]
    Sb_final = jnp.einsum("tlc,ic->itl", S_backcast, params["agg_w"]) + \
        params["agg_b"][:, None, None]                              # [tar_num, T, Lb]
    Sf_final = jnp.einsum("tlc,ic->itl", S_forecast, params["agg_w"]) + \
        params["agg_b"][:, None, None]                              # [tar_num, T, Lf]
    wt_t = params["wt"][tar_idx]                                    # [tar_num, U, T]
    Wb = jnp.einsum("iut,itl->iul", wt_t, Sb_final)                 # [tar_num, U, Lb]
    Wf = jnp.einsum("iut,itl->iul", wt_t, Sf_final)                 # [tar_num, U, Lf]
    Wbf = np.asarray(jnp.concatenate([Wb, Wf], axis=-1))            # [tar_num, U, Lb+Lf]

    w1_np = np.asarray(params["w1"]); b1_np = np.asarray(params["b1"])
    wh_np = np.asarray(params["wh"]); bh_np = np.asarray(params["bh"])

    W1blk = np.zeros((Lb * C, UT), np.float32)      # zeros => covariate channels elided
    b1blk = np.zeros((1, UT), np.float32)
    Whblk = np.zeros((NL1, UT, UT), np.float32)     # off-diagonal blocks exactly zero
    bhblk = np.zeros((NL1, 1, UT), np.float32)
    Wbfblk = np.zeros((UT, tar_num * L2), np.float32)
    for i, c in enumerate(tar_idx):
        rows = np.arange(Lb) * C + int(c)           # x[b, l, c] -> column l*C + c of x2
        W1blk[rows, i * U:(i + 1) * U] = w1_np[c]                   # (Lb, U)
        b1blk[0, i * U:(i + 1) * U] = b1_np[c, 0]
        Whblk[:, i * U:(i + 1) * U, i * U:(i + 1) * U] = wh_np[c]   # (NL1, U, U)
        bhblk[:, 0, i * U:(i + 1) * U] = bh_np[c, :, 0]
        Wbfblk[i * U:(i + 1) * U, i * L2:(i + 1) * L2] = Wbf[i]     # (U, Lb+Lf)

    # build-time guards: no cross-target leakage possible (blocks only, rest stays zero)
    assert np.count_nonzero(W1blk) <= tar_num * Lb * U
    assert np.count_nonzero(Whblk) <= tar_num * NL1 * U * U
    assert np.count_nonzero(Wbfblk) <= tar_num * U * L2

    fused = dict(
        W1=jnp.asarray(W1blk), b1=jnp.asarray(b1blk),
        Wh=jnp.asarray(Whblk), bh=jnp.asarray(bhblk),
        Wbf=jnp.asarray(Wbfblk),
    )
    meta = dict(tar_num=tar_num, backcast_length=Lb, forecast_length=Lf, units=U)
    return fused, meta


# --------------------------------------------------------------------------- #
# Forward pass (single pallas_call, no grid)
# --------------------------------------------------------------------------- #
def nbeats_seasonal_forward(x, fused, *, num_block_layers):
    """x: [B, Lb, C] f32 -> packed output [B, tar_num*(Lb+Lf)].

    The packed layout is [back_0 | fore_0 | back_1 | fore_1 | ...] along the last
    (lane) axis; use unpack_outputs()/to_torch_layout() off the hot path when the
    PyTorch [B, L, tar_num] layout is required.
    """
    B, Lb, C = x.shape
    UT = fused["W1"].shape[1]
    Npack = fused["Wbf"].shape[1]
    NL1 = num_block_layers - 1

    x2 = x.reshape(B, Lb * C)                        # free row-major view, no HBM pass

    flops = 2 * B * (Lb * C * UT + NL1 * UT * UT + UT * Npack)
    bytes_accessed = 4 * (x2.size + fused["W1"].size + fused["b1"].size +
                          fused["Wh"].size + fused["bh"].size + fused["Wbf"].size +
                          B * Npack)

    kernel = functools.partial(_fused_nbeats_kernel, n_hidden=NL1)
    vmem_spec = pl.BlockSpec(memory_space=pltpu.MemorySpace.VMEM)
    out = pl.pallas_call(
        kernel,
        out_shape=jax.ShapeDtypeStruct((B, Npack), jnp.float32),
        in_specs=[vmem_spec] * 6,
        out_specs=vmem_spec,
        cost_estimate=pl.CostEstimate(flops=flops, transcendentals=0,
                                      bytes_accessed=bytes_accessed),
    )(x2, fused["W1"], fused["b1"], fused["Wh"], fused["bh"], fused["Wbf"])
    return out


def unpack_outputs(packed, *, tar_num, backcast_length, forecast_length):
    """[B, tar_num*(Lb+Lf)] -> (back [B, tar_num, Lb], fore [B, tar_num, Lf])."""
    B = packed.shape[0]
    L2 = backcast_length + forecast_length
    y = packed.reshape(B, tar_num, L2)
    return y[..., :backcast_length], y[..., backcast_length:]


def to_torch_layout(y):
    """[B, tar_num, L] -> [B, L, tar_num] (matches torch.stack(..., dim=2))."""
    return jnp.transpose(y, (0, 2, 1))


# --------------------------------------------------------------------------- #
# Pure-JAX reference (mirrors the PyTorch module, torch layout) for sanity check
# --------------------------------------------------------------------------- #
def reference_forward(x, params, S_backcast, S_forecast, *, num_block_layers, tar_pos):
    B, Lb, C = x.shape
    NL1 = num_block_layers - 1
    amps = []
    for c in range(C):
        h = jnp.maximum(x[..., c] @ params["w1"][c] + params["b1"][c], 0.0)
        for l in range(NL1):
            h = jnp.maximum(h @ params["wh"][c, l] + params["bh"][c, l], 0.0)
        amps.append(h @ params["wt"][c])
    amp = jnp.stack(amps, axis=0)                                   # [C, B, T]
    Sb_final = jnp.einsum("tlc,ic->itl", S_backcast, params["agg_w"]) + \
        params["agg_b"][:, None, None]
    Sf_final = jnp.einsum("tlc,ic->itl", S_forecast, params["agg_w"]) + \
        params["agg_b"][:, None, None]
    back = jnp.stack([amp[n] @ Sb_final[i] for i, n in enumerate(tar_pos)], axis=2)
    fore = jnp.stack([amp[n] @ Sf_final[i] for i, n in enumerate(tar_pos)], axis=2)
    return back, fore                                               # [B, L, tar_num]


# --------------------------------------------------------------------------- #
if __name__ == "__main__":
    # small config consistent with the module defaults
    units = 32
    num_block_layers = 4
    backcast_length = 10
    forecast_length = 5
    thetas_dim = forecast_length          # nb_harmonics=None
    min_period = 1
    tar_num, cov_num = 2, 1
    tar_pos = [0, 2]
    C = tar_num + cov_num
    B = 8

    key = jax.random.PRNGKey(0)
    kx, kp = jax.random.split(key)
    x = jax.random.normal(kx, (B, backcast_length, C), jnp.float32)

    params = init_params(kp, units=units, thetas_dim=thetas_dim,
                         num_block_layers=num_block_layers,
                         backcast_length=backcast_length,
                         n_channels=C, tar_num=tar_num)
    S_backcast, S_forecast = make_seasonal_basis(
        backcast_length, forecast_length, thetas_dim, min_period, C)

    # one-time constant/param fold (hoisted out of the per-call forward)
    fused, meta = precompute_inference_params(params, S_backcast, S_forecast, tar_pos)
    fused = jax.block_until_ready(fused)

    forward = jax.jit(functools.partial(
        nbeats_seasonal_forward, num_block_layers=num_block_layers))

    packed = forward(x, fused)
    packed = jax.block_until_ready(packed)
    assert packed.shape == (B, tar_num * (backcast_length + forecast_length))

    back, fore = unpack_outputs(packed, tar_num=tar_num,
                                backcast_length=backcast_length,
                                forecast_length=forecast_length)
    assert back.shape == (B, tar_num, backcast_length)
    assert fore.shape == (B, tar_num, forecast_length)

    ref_b, ref_f = reference_forward(
        x, params, S_backcast, S_forecast,
        num_block_layers=num_block_layers, tar_pos=tar_pos)
    # NOT bit-exact: the theta∘seasonal fold + block-diag merge reassociate f32 matmuls.
    np.testing.assert_allclose(np.asarray(to_torch_layout(back)), np.asarray(ref_b),
                               rtol=1e-3, atol=1e-3)
    np.testing.assert_allclose(np.asarray(to_torch_layout(fore)), np.asarray(ref_f),
                               rtol=1e-3, atol=1e-3)

    print("KERNEL_OK")
</pallas_src>

<mosaic_0001>
module attributes {stable_mosaic.version = 11 : i64} {
  func.func @_fused_nbeats_kernel(%arg0: memref<8x30xf32, #tpu.memory_space<vmem>>, %arg1: memref<30x64xf32, #tpu.memory_space<vmem>>, %arg2: memref<1x64xf32, #tpu.memory_space<vmem>>, %arg3: memref<3x64x64xf32, #tpu.memory_space<vmem>>, %arg4: memref<3x1x64xf32, #tpu.memory_space<vmem>>, %arg5: memref<64x30xf32, #tpu.memory_space<vmem>>, %arg6: memref<8x30xf32, #tpu.memory_space<vmem>>) attributes {dimension_semantics = [], scalar_prefetch = 0 : i64, scratch_operands = 0 : i64, tpu.core_type = #tpu.core_type<tc>} {
    %c0 = arith.constant 0 : index
    %c0_0 = arith.constant 0 : index
    %0 = vector.load %arg0[%c0, %c0_0] : memref<8x30xf32, #tpu.memory_space<vmem>>, vector<8x30xf32>
    %c0_1 = arith.constant 0 : index
    %c0_2 = arith.constant 0 : index
    %1 = vector.load %arg1[%c0_1, %c0_2] : memref<30x64xf32, #tpu.memory_space<vmem>>, vector<30x64xf32>
    %cst = arith.constant dense<0.000000e+00> : vector<8x64xf32>
    %2 = tpu.matmul %0, %1, %cst {dimension_numbers = #tpu.dot_dimension_numbers<[1], [0], [0], [1], [0, 0, 1, 1], [], []>} : vector<8x30xf32>, vector<30x64xf32>, vector<8x64xf32> -> vector<8x64xf32>
    %c0_3 = arith.constant 0 : index
    %c0_4 = arith.constant 0 : index
    %3 = vector.load %arg2[%c0_3, %c0_4] : memref<1x64xf32, #tpu.memory_space<vmem>>, vector<1x64xf32>
    %4 = vector.broadcast %3 : vector<1x64xf32> to vector<8x64xf32>
    %5 = arith.addf %2, %4 : vector<8x64xf32>
    %cst_5 = arith.constant 0.000000e+00 : f32
    %6 = vector.broadcast %cst_5 : f32 to vector<8x64xf32>
    %7 = arith.maximumf %5, %6 : vector<8x64xf32>
    %c0_6 = arith.constant 0 : index
    %c0_7 = arith.constant 0 : index
    %c0_8 = arith.constant 0 : index
    %8 = vector.load %arg3[%c0_6, %c0_7, %c0_8] : memref<3x64x64xf32, #tpu.memory_space<vmem>>, vector<1x64x64xf32>
    %9 = vector.shape_cast %8 : vector<1x64x64xf32> to vector<64x64xf32>
    %cst_9 = arith.constant dense<0.000000e+00> : vector<8x64xf32>
    %10 = tpu.matmul %7, %9, %cst_9 {dimension_numbers = #tpu.dot_dimension_numbers<[1], [0], [0], [1], [0, 0, 1, 1], [], []>} : vector<8x64xf32>, vector<64x64xf32>, vector<8x64xf32> -> vector<8x64xf32>
    %c0_10 = arith.constant 0 : index
    %c0_11 = arith.constant 0 : index
    %c0_12 = arith.constant 0 : index
    %11 = vector.load %arg4[%c0_10, %c0_11, %c0_12] : memref<3x1x64xf32, #tpu.memory_space<vmem>>, vector<1x1x64xf32>
    %12 = vector.shape_cast %11 : vector<1x1x64xf32> to vector<1x64xf32>
    %13 = vector.broadcast %12 : vector<1x64xf32> to vector<8x64xf32>
    %14 = arith.addf %10, %13 : vector<8x64xf32>
    %cst_13 = arith.constant 0.000000e+00 : f32
    %15 = vector.broadcast %cst_13 : f32 to vector<8x64xf32>
    %16 = arith.maximumf %14, %15 : vector<8x64xf32>
    %c1 = arith.constant 1 : index
    %c0_14 = arith.constant 0 : index
    %c0_15 = arith.constant 0 : index
    %17 = vector.load %arg3[%c1, %c0_14, %c0_15] : memref<3x64x64xf32, #tpu.memory_space<vmem>>, vector<1x64x64xf32>
    %18 = vector.shape_cast %17 : vector<1x64x64xf32> to vector<64x64xf32>
    %cst_16 = arith.constant dense<0.000000e+00> : vector<8x64xf32>
    %19 = tpu.matmul %16, %18, %cst_16 {dimension_numbers = #tpu.dot_dimension_numbers<[1], [0], [0], [1], [0, 0, 1, 1], [], []>} : vector<8x64xf32>, vector<64x64xf32>, vector<8x64xf32> -> vector<8x64xf32>
    %c1_17 = arith.constant 1 : index
    %c0_18 = arith.constant 0 : index
    %c0_19 = arith.constant 0 : index
    %20 = vector.load %arg4[%c1_17, %c0_18, %c0_19] : memref<3x1x64xf32, #tpu.memory_space<vmem>>, vector<1x1x64xf32>
    %21 = vector.shape_cast %20 : vector<1x1x64xf32> to vector<1x64xf32>
    %22 = vector.broadcast %21 : vector<1x64xf32> to vector<8x64xf32>
    %23 = arith.addf %19, %22 : vector<8x64xf32>
    %cst_20 = arith.constant 0.000000e+00 : f32
    %24 = vector.broadcast %cst_20 : f32 to vector<8x64xf32>
    %25 = arith.maximumf %23, %24 : vector<8x64xf32>
    %c2 = arith.constant 2 : index
    %c0_21 = arith.constant 0 : index
    %c0_22 = arith.constant 0 : index
    %26 = vector.load %arg3[%c2, %c0_21, %c0_22] : memref<3x64x64xf32, #tpu.memory_space<vmem>>, vector<1x64x64xf32>
    %27 = vector.shape_cast %26 : vector<1x64x64xf32> to vector<64x64xf32>
    %cst_23 = arith.constant dense<0.000000e+00> : vector<8x64xf32>
    %28 = tpu.matmul %25, %27, %cst_23 {dimension_numbers = #tpu.dot_dimension_numbers<[1], [0], [0], [1], [0, 0, 1, 1], [], []>} : vector<8x64xf32>, vector<64x64xf32>, vector<8x64xf32> -> vector<8x64xf32>
    %c2_24 = arith.constant 2 : index
    %c0_25 = arith.constant 0 : index
    %c0_26 = arith.constant 0 : index
    %29 = vector.load %arg4[%c2_24, %c0_25, %c0_26] : memref<3x1x64xf32, #tpu.memory_space<vmem>>, vector<1x1x64xf32>
    %30 = vector.shape_cast %29 : vector<1x1x64xf32> to vector<1x64xf32>
    %31 = vector.broadcast %30 : vector<1x64xf32> to vector<8x64xf32>
    %32 = arith.addf %28, %31 : vector<8x64xf32>
    %cst_27 = arith.constant 0.000000e+00 : f32
    %33 = vector.broadcast %cst_27 : f32 to vector<8x64xf32>
    %34 = arith.maximumf %32, %33 : vector<8x64xf32>
    %c0_28 = arith.constant 0 : index
    %c0_29 = arith.constant 0 : index
    %35 = vector.load %arg5[%c0_28, %c0_29] : memref<64x30xf32, #tpu.memory_space<vmem>>, vector<64x30xf32>
    %cst_30 = arith.constant dense<0.000000e+00> : vector<8x30xf32>
    %36 = tpu.matmul %34, %35, %cst_30 {dimension_numbers = #tpu.dot_dimension_numbers<[1], [0], [0], [1], [0, 0, 1, 1], [], []>} : vector<8x64xf32>, vector<64x30xf32>, vector<8x30xf32> -> vector<8x30xf32>
    %c0_31 = arith.constant 0 : index
    %c0_32 = arith.constant 0 : index
    %37 = vector.load %arg6[%c0_31, %c0_32] : memref<8x30xf32, #tpu.memory_space<vmem>>, vector<8x30xf32>
    tpu.vector_store %arg6[%c0_31, %c0_32], %36 {strides = array<i32>} : memref<8x30xf32, #tpu.memory_space<vmem>>, vector<8x30xf32>,
    return
  }
}

</mosaic_0001>

<bundles_post_ra>
// kernel: nbeats_seasonal_forward.1
= control target key start
LH: loop header
LB: loop body
LE: loop exit
PB: predicated region body
PF: predicated region fallthrough
CT: control target
= control target key end

     0   :  { %vm40_vm0 = vcmask 1045504   ;;  %v723_v3 = vmov 0.0|0.0   ;;  %vm724_vm1 = vmmov 0   ;;  %v725_v6 = vmov 0.0   ;;  %s933_s0 = inlined_call_operand.vmem [shape: f32[8,30], index: 0, kind: input, shape index: {}]   ;;  %s934_s1 = inlined_call_operand.vmem [shape: f32[30,64], index: 1, kind: input, shape index: {}]   ;;  %s935_s2 = inlined_call_operand.vmem [shape: f32[1,64], index: 2, kind: input, shape index: {}]   ;;  %s936_s3 = inlined_call_operand.vmem [shape: f32[3,64,64], index: 3, kind: input, shape index: {}]   ;;  %s937_s4 = inlined_call_operand.vmem [shape: f32[3,1,64], index: 4, kind: input, shape index: {}]   ;;  %s938_s5 = inlined_call_operand.vmem [shape: f32[64,30], index: 5, kind: input, shape index: {}]   ;;  %s939_s6 = inlined_call_operand.hbm [shape: f32[8,30], index: 6, kind: output, shape index: {}]  }
   0x1   :  { %v25_v0 = vld [vmem:[%s934_s1] sm:$0xff]  ;;  %v26_v1 = vld [vmem:[%s934_s1 + $0x8] sm:$0xff]  ;;  %v27_v2 = vld [vmem:[%s934_s1 + $0x10] sm:$0xff]  ;;  %639 = vmatprep.subr.bf16.mxu0 %v723_v3  ;;  %646 = vmatprep.subr.bf16.mxu1 %v723_v3  ;;  %vm726_vm2 = vmmov 1  }
   0x2   :  { %v640_v4 = vpack.c.bf16 %v26_v1, %v25_v0  ;;  %v28_v5 = vld [vmem:[%s934_s1 + $0x18] sm:$0x3f]  ;;  %560 = vmatprep.mubr.msk.f32.mxu0 %vm724_vm1, %v725_v6  ;;  %v115_v7 = vld [vmem:[%s936_s3] sm:$0xff]  ;;  %v116_v8 = vld [vmem:[%s936_s3 + $0x8] sm:$0xff]  ;;  %579 = vmatprep.mubr.msk.f32.mxu1 %vm724_vm1, %v725_v6 }
   0x3   :  { %v117_v9 = vld [vmem:[%s936_s3 + $0x10] sm:$0xff]  ;;  %v643_v10 = vpack.c.bf16 %v28_v5, %v27_v2  ;;  %vm644_vm3 = vmpackc.low %vm40_vm0, %vm726_vm2  ;;  %v647_v11 = vpack.c.bf16 %v116_v8, %v115_v7  ;;  %v118_v12 = vld [vmem:[%s936_s3 + $0x18] sm:$0xff] }
   0x4   :  { %641 = vmatpush3.bf16.msra.mxu0 %v640_v4 }
   0x5   :  { %642 = vmatprep.subr.bf16.mxu0 %v723_v3 }
   0x6   :  { %11 = vsyncpa [#allocation3], 0  ;;  %648 = vmatpush3.bf16.msra.mxu1 %v647_v11  ;;  %v650_v13 = vpack.c.bf16 %v118_v12, %v117_v9  ;;  %v119_v14 = vld [vmem:[%s936_s3 + $0x20] sm:$0xff]  ;;  %v120_v15 = vld [vmem:[%s936_s3 + $0x28] sm:$0xff]  ;;  %vm36_vm4 = vcmask 244736   ;;  %vm130_vm5 = vcmask 523264  }
   0x7   :  { %649 = vmatprep.subr.bf16.mxu1 %v723_v3  ;;  %v24_v16 = vld [vmem:[%s933_s0] sm:$0xff]  ;;  %v653_v17 = vpack.c.bf16 %v120_v15, %v119_v14  ;;  %v121_v18 = vld [vmem:[%s936_s3 + $0x30] sm:$0xff]  ;;  %v122_v19 = vld [vmem:[%s936_s3 + $0x38] sm:$0xff]  ;;  %s727_s22 = smov [#allocation2]  }
   0x8   :  { %645 = vmatpush3.bf16.msk.msra.mxu0 %vm644_vm3, %v643_v10  ;;  %v656_v20 = vpack.c.bf16 %v122_v19, %v121_v18  ;;  %v488_v21 = vld [vmem:[%s936_s3 + $0x40] sm:$0xff]  ;;  %v489_v22 = vld [vmem:[%s936_s3 + $0x48] sm:$0xff]  ;;  %v490_v23 = vld [vmem:[%s936_s3 + $0x50] sm:$0xff]  ;;  %s475_s23 = sshll.u32 %s727_s22, 4  ;;  %s476_s23 = int_to_ptr.vmem [resolvable:$true] %s475_s23 }
   0x9   :  { %658 = vmatprep.subr.bf16.mxu0 %v723_v3  ;;  %v659_v24 = vpack.c.bf16 %v489_v22, %v488_v21  ;;  %v491_v25 = vld [vmem:[%s936_s3 + $0x58] sm:$0xff]  ;;  %v492_v27 = vld [vmem:[%s936_s3 + $0x60] sm:$0xff]  ;;  %v493_v28 = vld [vmem:[%s936_s3 + $0x68] sm:$0xff]  ;;  %p704_p1 = scmp.lt.s32.totalorder %s476_s23, %s476_s23 }
   0xa   :  { %651 = vmatpush3.bf16.msra.mxu1 %v650_v13  ;;  %v662_v26 = vpack.c.bf16 %v491_v25, %v490_v23  ;;  %v665_v29 = vpack.c.bf16 %v493_v28, %v492_v27  ;;  %v483_v30 = vld [vmem:[%s935_s2] ss:$0 sm:$0xff]  ;;  %v494_v35 = vld [vmem:[%s936_s3 + $0x70] sm:$0xff]  ;;  %v495_v36 = vld [vmem:[%s936_s3 + $0x78] sm:$0xff] }
   0xb   :  { %561 = vmatmul.mubr.msk.f32.vlgmr.msra.gmra.mrb[0].mxu0 %vm36_vm4, %v24_v16  ;;  %652 = vmatprep.subr.bf16.mxu1 %v723_v3  ;;  %v668_v37 = vpack.c.bf16 %v495_v36, %v494_v35  ;;  %v499_v38 = vld [vmem:[%s936_s3 + $0x80] sm:$0xff]  ;;  %v500_v39 = vld [vmem:[%s936_s3 + $0x88] sm:$0xff]  ;;  %v501_v40 = vld [vmem:[%s936_s3 + $0x90] sm:$0xff] }
   0xc   :  { %598 = vmatprep.mubr.msk.f32.mxu0 %vm724_vm1, %v725_v6  ;;  %660 = vmatpush3.bf16.msra.mxu0 %v659_v24  ;;  %v671_v41 = vpack.c.bf16 %v500_v39, %v499_v38  ;;  %v502_v42 = vld [vmem:[%s936_s3 + $0x98] sm:$0xff]  ;;  %v503_v44 = vld [vmem:[%s936_s3 + $0xa0] sm:$0xff]  ;;  %v504_v45 = vld [vmem:[%s936_s3 + $0xa8] sm:$0xff] }
   0xd   :  { %661 = vmatprep.subr.bf16.mxu0 %v723_v3  ;;  %v674_v43 = vpack.c.bf16 %v502_v42, %v501_v40  ;;  %v677_v46 = vpack.c.bf16 %v504_v45, %v503_v44  ;;  %v486_v47 = vld [vmem:[%s937_s4] ss:$0 sm:$0xff]  ;;  %v505_v52 = vld [vmem:[%s936_s3 + $0xb0] sm:$0xff]  ;;  %v506_v53 = vld [vmem:[%s936_s3 + $0xb8] sm:$0xff] }
   0xe   :  { %654 = vmatpush3.bf16.msra.mxu1 %v653_v17  ;;  %v680_v54 = vpack.c.bf16 %v506_v53, %v505_v52  ;;  %v387_v55 = vld [vmem:[%s938_s5] sm:$0xff]  ;;  %v388_v56 = vld [vmem:[%s938_s5 + $0x8] sm:$0xff]  ;;  %v389_v57 = vld [vmem:[%s938_s5 + $0x10] sm:$0xff] }
   0xf   :  { %655 = vmatprep.subr.bf16.mxu1 %v723_v3  ;;  %v683_v58 = vpack.c.bf16 %v388_v56, %v387_v55  ;;  %v390_v59 = vld [vmem:[%s938_s5 + $0x18] sm:$0xff]  ;;  %v391_v61 = vld [vmem:[%s938_s5 + $0x20] sm:$0xff]  ;;  %v392_v62 = vld [vmem:[%s938_s5 + $0x28] sm:$0xff] }
  0x10   :  { %663 = vmatpush3.bf16.msra.mxu0 %v662_v26  ;;  %v686_v60 = vpack.c.bf16 %v390_v59, %v389_v57  ;;  %v689_v63 = vpack.c.bf16 %v392_v62, %v391_v61  ;;  %v497_v0 = vld [vmem:[%s937_s4 + $0x1] ss:$0 sm:$0xff]  ;;  %v394_v7 = vld [vmem:[%s938_s5 + $0x38] sm:$0xff] }
  0x11   :  { %664 = vmatprep.subr.bf16.mxu0 %v723_v3 }
  0x12   :  { %657 = vmatpush3.bf16.msra.mxu1 %v656_v20 }
  0x13   :  { %670 = vmatprep.subr.bf16.mxu1 %v723_v3 }
  0x14   :  { %666 = vmatpush3.bf16.msra.mxu0 %v665_v29 }
  0x15   :  { %667 = vmatprep.subr.bf16.mxu0 %v723_v3 }
  0x18   :  { %669 = vmatpush3.bf16.msra.mxu0 %v668_v37 }
  0x19   :  { %682 = vmatprep.subr.bf16.mxu0 %v723_v3 }
  0xde   :  { %v110_v31 = vpop.f32.mrb[0].mxu0 }
  0xdf   :  { %v111_v32 = vadd.f32 %v483_v30, %v110_v31  ;;  %v562_v33 = vpop.f32.mrb[1].mxu0 }
  0xe1   :  { %v114_v34 = vmax.f32 %v111_v32, 0.0 }
  0xe3   :  { %580 = vmatmul.mubr.msk.f32.vlgmr.msra.gmra.mrb[0].mxu1 %vm130_vm5, %v114_v34 }
  0xe4   :  { %617 = vmatprep.mubr.msk.f32.mxu1 %vm724_vm1, %v725_v6  ;;  %672 = vmatpush3.bf16.msra.mxu1 %v671_v41 }
  0xe5   :  { %673 = vmatprep.subr.bf16.mxu1 %v723_v3 }
  0xe8   :  { %675 = vmatpush3.bf16.msra.mxu1 %v674_v43 }
  0xe9   :  { %676 = vmatprep.subr.bf16.mxu1 %v723_v3 }
  0xec   :  { %678 = vmatpush3.bf16.msra.mxu1 %v677_v46 }
  0xed   :  { %679 = vmatprep.subr.bf16.mxu1 %v723_v3 }
  0xf0   :  { %681 = vmatpush3.bf16.msra.mxu1 %v680_v54 }
 0x1b6   :  { %v200_v48 = vpop.f32.mrb[0].mxu1 }
 0x1b7   :  { %v201_v49 = vadd.f32 %v486_v47, %v200_v48  ;;  %v581_v50 = vpop.f32.mrb[1].mxu1 }
 0x1b9   :  { %v204_v51 = vmax.f32 %v201_v49, 0.0 }
 0x1bb   :  { %599 = vmatmul.mubr.msk.f32.vlgmr.msra.gmra.mrb[2].mxu0 %vm130_vm5, %v204_v51 }
 0x1bc   :  { %636 = vmatprep.mubr.msk.f32.mxu0 %vm724_vm1, %v725_v6  ;;  %684 = vmatpush3.bf16.msra.mxu0 %v683_v58  ;;  %v393_v6 = vld [vmem:[%s938_s5 + $0x30] sm:$0xff]  ;;  %s699_s5 = scalar_lea.vmem %s476_s23, 128 }
 0x1bd   :  { %685 = vmatprep.subr.bf16.mxu0 %v723_v3  ;;  %v692_v8 = vpack.c.bf16 %v394_v7, %v393_v6  ;;  %p700_p0 = scmp.ne.s32.totalorder %s476_s23, %s699_s5  ;;  %p705_p2 = scmp.lt.s32.totalorder %s699_s5, %s699_s5 }
 0x1bf   :  { %p706_p3 = por %p705_p2, %p704_p1 }
 0x1c0   :  { %687 = vmatpush3.bf16.msra.mxu0 %v686_v60 }
 0x1c1   :  { %688 = vmatprep.subr.bf16.mxu0 %v723_v3  ;;  %p707_p4 = pnand %p706_p3, %p700_p0 }
 0x1c4   :  { %690 = vmatpush3.bf16.msra.mxu0 %v689_v63 }
 0x1c5   :  { %691 = vmatprep.subr.bf16.mxu0 %v723_v3  ;;  %v508_v3 = vld [vmem:[%s937_s4 + $0x2] ss:$0 sm:$0xff] }
 0x1c8   :  { %693 = vmatpush3.bf16.msra.mxu0 %v692_v8 }
 0x28e   :  { %v291_v1 = vpop.f32.mrb[2].mxu0 }
 0x28f   :  { %v292_v2 = vadd.f32 %v497_v0, %v291_v1  ;;  %v600_v4 = vpop.f32.mrb[3].mxu0 }
 0x291   :  { %v295_v5 = vmax.f32 %v292_v2, 0.0 }
 0x293   :  { %618 = vmatmul.mubr.msk.f32.vlgmr.msra.gmra.mrb[2].mxu1 %vm130_vm5, %v295_v5 }
 0x366   :  { %v382_v9 = vpop.f32.mrb[2].mxu1 }
 0x367   :  { %v383_v10 = vadd.f32 %v508_v3, %v382_v9  ;;  %v619_v11 = vpop.f32.mrb[3].mxu1 }
 0x369   :  { %v386_v12 = vmax.f32 %v383_v10, 0.0 }
 0x36b   :  { %637 = vmatmul.mubr.msk.f32.vlgmr.msra.gmra.mrb[4].mxu0 %vm130_vm5, %v386_v12 }
 0x43e   :  { %v464_v13 = vpop.f32.mrb[4].mxu0 }
 0x43f   :  { %468 = vst.msk [vmem:[#allocation2] sm:$0xff] %vm36_vm4, %v464_v13  ;;  %v638_v14 = vpop.f32.mrb[5].mxu0 }
 0x440   :  { %710 = shalt.err (!%p707_p4)
}
 0x441   :  { %s711_s25 = scalar_lea.hbm %s939_s6, 128 }
 0x442   :  { %p712_p5 = scmp.ne.s32.totalorder %s939_s6, %s711_s25  ;;  %p715_p6 = scmp.lt.u32.totalorder %s711_s25, %s939_s6 }
 0x444   :  { %p717_p7 = pnand %p715_p6, %p712_p5 }
 0x446   :  { %720 = shalt.err (!%p717_p7)
}
 0x447   :  { %478 = dma.vmem_to_hbm [thread:$0]  %s476_s23, 128, %s939_s6, [#allocation3]  }
 0x448   :  { %721 = dma.done.wait [#allocation3], 128  }
 0x449   :  { %722 = vsyncadd [#allocation3], 4294967168 }
 0x44a   :  { %482 = vsyncpa [#allocation3], 1 }

</bundles_post_ra>
